<compile_context>
chip_gen: v7x
topology: tpu7x:2x2x1
jax: 0.10.0
libtpu: 0.0.40
codegen_flags: <defaults>
</compile_context>

<pallas_src>
import jax
import jax.numpy as jnp
from jax import lax
from jax.experimental import pallas as pl
from jax.experimental.pallas import tpu as pltpu

# ------------------------- model hyper-parameters ---------------------------
NUM_FEATURES = 16
HIDDEN_DIM = 32
NUM_LAYERS = 3
NUM_CLASSES = 2
DROPOUT = 0.0          # forward skips dropout when dropout_val == 0
N_NODES = 32
N_EDGES = 64
N_GRAPHS = 2

# bf16 operands for the conv-layer MXU matmuls (accumulation stays f32).
CONV_MATMUL_DTYPE = jnp.bfloat16

_VMEM = pl.BlockSpec(memory_space=pltpu.MemorySpace.VMEM)


# ------------------------------ fused kernel --------------------------------
def make_gcn_fused_kernel(num_layers):
    """Builds the fused forward kernel for a fixed number of conv layers."""

    def kernel(*refs):
        (src_ref, dst_ref, batch_ref, x_ref) = refs[:4]
        conv_refs = refs[4:4 + 2 * num_layers]
        (gate_w_ref, gate_b_ref, lin1_w_ref, lin1_b_ref,
         pred_w_ref, pred_b_ref, o_ref, xcat_ref) = refs[4 + 2 * num_layers:]

        n = x_ref.shape[0]
        e = src_ref.shape[1]
        g = o_ref.shape[0]
        cdt = CONV_MATMUL_DTYPE

        # ---- Â = D^-1/2 (A + I) D^-1/2, built on the MXU (no scatter) ------
        node_iota = lax.broadcasted_iota(jnp.int32, (n, e), 0)
        onehot_dst = (node_iota == dst_ref[...]).astype(jnp.float32)   # [N,E]
        onehot_src = (node_iota == src_ref[...]).astype(jnp.float32)   # [N,E]
        # A[i, j] = #edges j -> i (duplicate edges summed, matching PyG).
        a = lax.dot_general(onehot_dst, onehot_src,
                            (((1,), (1,)), ((), ())),
                            preferred_element_type=jnp.float32)        # [N,N]
        row_i = lax.broadcasted_iota(jnp.int32, (n, n), 0)
        col_i = lax.broadcasted_iota(jnp.int32, (n, n), 1)
        a = a + (row_i == col_i).astype(jnp.float32)                   # A + I
        deg = jnp.sum(a, axis=1, keepdims=True)                        # [N,1]
        dinv = jnp.where(deg > 0.0, lax.rsqrt(deg), 0.0)               # [N,1]
        # Â @ Y == (dinv ⊙_rows (A+I)) @ (dinv ⊙_rows Y): only row scalings,
        # so no [N,1] -> [1,N] transpose is ever materialized.
        m = (dinv * a).astype(cdt)                                     # [N,N]

        # ---- conv stack; each ReLU output goes into the xcat VMEM scratch --
        h_dim = conv_refs[0].shape[1]
        h = x_ref[...]                                                  # f32
        for l in range(num_layers):
            w_ref = conv_refs[2 * l]
            b_ref = conv_refs[2 * l + 1]
            hn = (dinv * h).astype(cdt)            # D^-1/2-scaled layer input
            if w_ref.shape[0] < w_ref.shape[1]:
                # in_dim < out_dim (layer 1): aggregate first, (Â X) W.
                agg = jnp.dot(m, hn, preferred_element_type=jnp.float32)
                pre = jnp.dot(agg.astype(cdt), w_ref[...].astype(cdt),
                              preferred_element_type=jnp.float32)
            else:
                xw = jnp.dot(hn, w_ref[...].astype(cdt),
                             preferred_element_type=jnp.float32)
                pre = jnp.dot(m, xw.astype(cdt),
                              preferred_element_type=jnp.float32)
            h = jnp.maximum(pre + b_ref[...], 0.0)                     # [N,H]
            xcat_ref[:, l * h_dim:(l + 1) * h_dim] = h

        xcat = xcat_ref[...]                       # [N, num_layers*H] (f32)

        # ---- attention pooling + lin1 + relu + pred (all f32) --------------
        # gate scores computed directly as [1, N] (avoids a transpose):
        gate = lax.dot_general(gate_w_ref[...], xcat,
                               (((0,), (1,)), ((), ())),
                               preferred_element_type=jnp.float32)     # [1,N]
        gate = gate + gate_b_ref[...]
        graph_i = lax.broadcasted_iota(jnp.int32, (g, n), 0)
        mask = graph_i == batch_ref[...]                               # [G,N]
        scores = jnp.where(mask, gate, -1e30)
        mx = jnp.max(scores, axis=-1, keepdims=True)                   # [G,1]
        ex = jnp.where(mask, jnp.exp(scores - mx), 0.0)                # [G,N]
        s = jnp.maximum(jnp.sum(ex, axis=-1, keepdims=True), 1e-30)    # guard
        alpha = ex / s                                                 # [G,N]
        pooled = jnp.dot(alpha, xcat, preferred_element_type=jnp.float32)

        hh = jnp.dot(pooled, lin1_w_ref[...], preferred_element_type=jnp.float32)
        hh = jnp.maximum(hh + lin1_b_ref[...], 0.0)
        # dropout_val == 0.0 -> dropout skipped (matches the PyTorch forward)
        out = jnp.dot(hh, pred_w_ref[...], preferred_element_type=jnp.float32)
        o_ref[...] = out + pred_b_ref[...]                             # [G,C]

    return kernel


# ------------------------------- JAX wrapper ---------------------------------
def gcn_forward(x, edge_index, batch, params, num_graphs=N_GRAPHS):
    x = x[:, :NUM_FEATURES].astype(jnp.float32)
    n = x.shape[0]
    e = edge_index.shape[1]
    num_layers = len(params["convs"])
    d = num_layers * params["convs"][0][0].shape[1]

    src = edge_index[0].reshape(1, e).astype(jnp.int32)
    dst = edge_index[1].reshape(1, e).astype(jnp.int32)
    batch2d = batch.reshape(1, n).astype(jnp.int32)

    conv_args = []
    for (w, b) in params["convs"]:
        conv_args += [w.astype(jnp.float32), b.reshape(1, -1).astype(jnp.float32)]

    kernel = make_gcn_fused_kernel(num_layers)
    n_inputs = 4 + len(conv_args) + 6

    return pl.pallas_call(
        kernel,
        out_shape=jax.ShapeDtypeStruct((num_graphs, NUM_CLASSES), jnp.float32),
        in_specs=[_VMEM] * n_inputs,
        out_specs=_VMEM,
        scratch_shapes=[pltpu.VMEM((n, d), jnp.float32)],
    )(src, dst, batch2d, x, *conv_args,
      params["gate_w"], params["gate_b"].reshape(1, 1),
      params["lin1_w"], params["lin1_b"].reshape(1, -1),
      params["pred_w"], params["pred_b"].reshape(1, -1))


# ------------------------------ init & reference -----------------------------
def glorot(key, shape):
    fan_in, fan_out = shape[0], shape[1]
    limit = jnp.sqrt(6.0 / (fan_in + fan_out))
    return jax.random.uniform(key, shape, jnp.float32, -limit, limit)


def init_params(key):
    keys = jax.random.split(key, 8)
    convs = [(glorot(keys[0], (NUM_FEATURES, HIDDEN_DIM)),
              jnp.zeros((HIDDEN_DIM,), jnp.float32))]
    for i in range(NUM_LAYERS - 1):
        convs.append((glorot(keys[1 + i], (HIDDEN_DIM, HIDDEN_DIM)),
                      jnp.zeros((HIDDEN_DIM,), jnp.float32)))
    d = NUM_LAYERS * HIDDEN_DIM
    return dict(
        convs=convs,
        gate_w=glorot(keys[4], (d, 1)),
        gate_b=jnp.zeros((1,), jnp.float32),
        lin1_w=glorot(keys[5], (d, HIDDEN_DIM)),
        lin1_b=jnp.zeros((HIDDEN_DIM,), jnp.float32),
        pred_w=glorot(keys[6], (HIDDEN_DIM, NUM_CLASSES)),
        pred_b=jnp.zeros((NUM_CLASSES,), jnp.float32),
    )


def gcn_forward_ref(x, edge_index, batch, params, num_graphs=N_GRAPHS):
    """Pure-JAX f32 reference (for a loose numerical check only)."""
    x = x[:, :NUM_FEATURES]
    n = x.shape[0]
    a = jnp.zeros((n, n), jnp.float32).at[edge_index[1], edge_index[0]].add(1.0)
    a = a + jnp.eye(n, dtype=jnp.float32)
    deg = jnp.sum(a, axis=1)
    dinv = jnp.where(deg > 0.0, 1.0 / jnp.sqrt(deg), 0.0)
    a_hat = dinv[:, None] * a * dinv[None, :]
    xs, h = [], x
    for w, b in params["convs"]:
        h = jax.nn.relu(a_hat @ (h @ w) + b)
        xs.append(h)
    xcat = jnp.concatenate(xs, axis=1)
    gate = (xcat @ params["gate_w"])[:, 0] + params["gate_b"][0]
    mask = batch[None, :] == jnp.arange(num_graphs)[:, None]
    alpha = jax.nn.softmax(jnp.where(mask, gate[None, :], -jnp.inf), axis=-1)
    pooled = alpha @ xcat
    hh = jax.nn.relu(pooled @ params["lin1_w"] + params["lin1_b"])
    return hh @ params["pred_w"] + params["pred_b"]


# --------------------------------- main --------------------------------------
if __name__ == "__main__":
    key = jax.random.PRNGKey(0)
    k_x, k_e1, k_e2, k_p = jax.random.split(key, 4)

    # node features: [N, F]
    x = jax.random.normal(k_x, (N_NODES, NUM_FEATURES), jnp.float32)

    # two graphs of 16 nodes each; random directed edges within each graph
    per_graph = N_NODES // N_GRAPHS
    e_per_graph = N_EDGES // N_GRAPHS
    src0 = jax.random.randint(k_e1, (e_per_graph,), 0, per_graph)
    dst0 = jax.random.randint(k_e2, (e_per_graph,), 0, per_graph)
    src = jnp.concatenate([src0, src0 + per_graph])
    dst = jnp.concatenate([dst0, dst0 + per_graph])
    edge_index = jnp.stack([src, dst]).astype(jnp.int32)          # [2, E]

    batch = jnp.concatenate([jnp.zeros((per_graph,), jnp.int32),
                             jnp.ones((per_graph,), jnp.int32)])  # [N]

    params = init_params(k_p)

    fwd = jax.jit(gcn_forward)
    out = jax.block_until_ready(fwd(x, edge_index, batch, params))

    assert out.shape == (N_GRAPHS, NUM_CLASSES)
    assert jnp.all(jnp.isfinite(out))

    # loose check vs. pure-JAX f32 reference (kernel uses bf16 MXU operands)
    ref = gcn_forward_ref(x, edge_index, batch, params)
    assert jnp.allclose(out, ref, atol=0.1, rtol=0.1)

    print("KERNEL_OK")
</pallas_src>

<mosaic_0001>
module attributes {stable_mosaic.version = 11 : i64} {
  func.func @kernel(%arg0: memref<1x64xi32, #tpu.memory_space<vmem>>, %arg1: memref<1x64xi32, #tpu.memory_space<vmem>>, %arg2: memref<1x32xi32, #tpu.memory_space<vmem>>, %arg3: memref<32x16xf32, #tpu.memory_space<vmem>>, %arg4: memref<16x32xf32, #tpu.memory_space<vmem>>, %arg5: memref<1x32xf32, #tpu.memory_space<vmem>>, %arg6: memref<32x32xf32, #tpu.memory_space<vmem>>, %arg7: memref<1x32xf32, #tpu.memory_space<vmem>>, %arg8: memref<32x32xf32, #tpu.memory_space<vmem>>, %arg9: memref<1x32xf32, #tpu.memory_space<vmem>>, %arg10: memref<96x1xf32, #tpu.memory_space<vmem>>, %arg11: memref<1x1xf32, #tpu.memory_space<vmem>>, %arg12: memref<96x32xf32, #tpu.memory_space<vmem>>, %arg13: memref<1x32xf32, #tpu.memory_space<vmem>>, %arg14: memref<32x2xf32, #tpu.memory_space<vmem>>, %arg15: memref<1x2xf32, #tpu.memory_space<vmem>>, %arg16: memref<2x2xf32, #tpu.memory_space<vmem>>, %arg17: memref<32x96xf32, #tpu.memory_space<vmem>>) attributes {dimension_semantics = [], scalar_prefetch = 0 : i64, scratch_operands = 1 : i64, tpu.core_type = #tpu.core_type<tc>} {
    %0 = tpu.iota {dimensions = array<i32: 0>} : vector<32x64xi32>
    %c0 = arith.constant 0 : index
    %c0_0 = arith.constant 0 : index
    %1 = vector.load %arg1[%c0, %c0_0] : memref<1x64xi32, #tpu.memory_space<vmem>>, vector<1x64xi32>
    %2 = vector.broadcast %1 : vector<1x64xi32> to vector<32x64xi32>
    %3 = arith.cmpi eq, %0, %2 : vector<32x64xi32>
    %4 = arith.extui %3 : vector<32x64xi1> to vector<32x64xi32>
    %5 = arith.sitofp %4 : vector<32x64xi32> to vector<32x64xf32>
    %c0_1 = arith.constant 0 : index
    %c0_2 = arith.constant 0 : index
    %6 = vector.load %arg0[%c0_1, %c0_2] : memref<1x64xi32, #tpu.memory_space<vmem>>, vector<1x64xi32>
    %7 = vector.broadcast %6 : vector<1x64xi32> to vector<32x64xi32>
    %8 = arith.cmpi eq, %0, %7 : vector<32x64xi32>
    %9 = arith.extui %8 : vector<32x64xi1> to vector<32x64xi32>
    %10 = arith.sitofp %9 : vector<32x64xi32> to vector<32x64xf32>
    %cst = arith.constant dense<0.000000e+00> : vector<32x32xf32>
    %11 = tpu.matmul %5, %10, %cst {dimension_numbers = #tpu.dot_dimension_numbers<[1], [1], [0], [0], [0, 0, 1, 0], [], []>} : vector<32x64xf32>, vector<32x64xf32>, vector<32x32xf32> -> vector<32x32xf32>
    %12 = tpu.iota {dimensions = array<i32: 0>} : vector<32x32xi32>
    %13 = tpu.iota {dimensions = array<i32: 1>} : vector<32x32xi32>
    %14 = arith.cmpi eq, %12, %13 : vector<32x32xi32>
    %15 = arith.extui %14 : vector<32x32xi1> to vector<32x32xi32>
    %16 = arith.sitofp %15 : vector<32x32xi32> to vector<32x32xf32>
    %17 = arith.addf %11, %16 : vector<32x32xf32>
    %cst_3 = arith.constant dense<0.000000e+00> : vector<32xf32>
    %18 = vector.multi_reduction <add>, %17, %cst_3 [1] : vector<32x32xf32> to vector<32xf32>
    %19 = vector.shape_cast %18 : vector<32xf32> to vector<32x1xf32>
    %cst_4 = arith.constant 0.000000e+00 : f32
    %20 = vector.broadcast %cst_4 : f32 to vector<32x1xf32>
    %21 = arith.cmpf ogt, %19, %20 : vector<32x1xf32>
    %22 = math.rsqrt %19 : vector<32x1xf32>
    %cst_5 = arith.constant 0.000000e+00 : f32
    %23 = vector.broadcast %cst_5 : f32 to vector<32x1xf32>
    %24 = arith.select %21, %22, %23 : vector<32x1xi1>, vector<32x1xf32>
    %25 = vector.broadcast %24 : vector<32x1xf32> to vector<32x32xf32>
    %26 = arith.mulf %25, %17 : vector<32x32xf32>
    %27 = arith.truncf %26 : vector<32x32xf32> to vector<32x32xbf16>
    %c0_6 = arith.constant 0 : index
    %c0_7 = arith.constant 0 : index
    %28 = vector.load %arg3[%c0_6, %c0_7] : memref<32x16xf32, #tpu.memory_space<vmem>>, vector<32x16xf32>
    %29 = vector.broadcast %24 : vector<32x1xf32> to vector<32x16xf32>
    %30 = arith.mulf %29, %28 : vector<32x16xf32>
    %31 = arith.truncf %30 : vector<32x16xf32> to vector<32x16xbf16>
    %cst_8 = arith.constant dense<0.000000e+00> : vector<32x16xf32>
    %32 = tpu.matmul %27, %31, %cst_8 {dimension_numbers = #tpu.dot_dimension_numbers<[1], [0], [0], [1], [0, 0, 1, 1], [], []>} : vector<32x32xbf16>, vector<32x16xbf16>, vector<32x16xf32> -> vector<32x16xf32>
    %33 = arith.truncf %32 : vector<32x16xf32> to vector<32x16xbf16>
    %c0_9 = arith.constant 0 : index
    %c0_10 = arith.constant 0 : index
    %34 = vector.load %arg4[%c0_9, %c0_10] : memref<16x32xf32, #tpu.memory_space<vmem>>, vector<16x32xf32>
    %35 = arith.truncf %34 : vector<16x32xf32> to vector<16x32xbf16>
    %cst_11 = arith.constant dense<0.000000e+00> : vector<32x32xf32>
    %36 = tpu.matmul %33, %35, %cst_11 {dimension_numbers = #tpu.dot_dimension_numbers<[1], [0], [0], [1], [0, 0, 1, 1], [], []>} : vector<32x16xbf16>, vector<16x32xbf16>, vector<32x32xf32> -> vector<32x32xf32>
    %c0_12 = arith.constant 0 : index
    %c0_13 = arith.constant 0 : index
    %37 = vector.load %arg5[%c0_12, %c0_13] : memref<1x32xf32, #tpu.memory_space<vmem>>, vector<1x32xf32>
    %38 = vector.broadcast %37 : vector<1x32xf32> to vector<32x32xf32>
    %39 = arith.addf %36, %38 : vector<32x32xf32>
    %cst_14 = arith.constant 0.000000e+00 : f32
    %40 = vector.broadcast %cst_14 : f32 to vector<32x32xf32>
    %41 = arith.maximumf %39, %40 : vector<32x32xf32>
    %c0_15 = arith.constant 0 : index
    %c0_16 = arith.constant 0 : index
    %42 = vector.load %arg17[%c0_15, %c0_16] : memref<32x96xf32, #tpu.memory_space<vmem>>, vector<32x32xf32>
    tpu.vector_store %arg17[%c0_15, %c0_16], %41 {strides = array<i32>} : memref<32x96xf32, #tpu.memory_space<vmem>>, vector<32x32xf32>,
    %43 = vector.broadcast %24 : vector<32x1xf32> to vector<32x32xf32>
    %44 = arith.mulf %43, %41 : vector<32x32xf32>
    %45 = arith.truncf %44 : vector<32x32xf32> to vector<32x32xbf16>
    %c0_17 = arith.constant 0 : index
    %c0_18 = arith.constant 0 : index
    %46 = vector.load %arg6[%c0_17, %c0_18] : memref<32x32xf32, #tpu.memory_space<vmem>>, vector<32x32xf32>
    %47 = arith.truncf %46 : vector<32x32xf32> to vector<32x32xbf16>
    %cst_19 = arith.constant dense<0.000000e+00> : vector<32x32xf32>
    %48 = tpu.matmul %45, %47, %cst_19 {dimension_numbers = #tpu.dot_dimension_numbers<[1], [0], [0], [1], [0, 0, 1, 1], [], []>} : vector<32x32xbf16>, vector<32x32xbf16>, vector<32x32xf32> -> vector<32x32xf32>
    %49 = arith.truncf %48 : vector<32x32xf32> to vector<32x32xbf16>
    %cst_20 = arith.constant dense<0.000000e+00> : vector<32x32xf32>
    %50 = tpu.matmul %27, %49, %cst_20 {dimension_numbers = #tpu.dot_dimension_numbers<[1], [0], [0], [1], [0, 0, 1, 1], [], []>} : vector<32x32xbf16>, vector<32x32xbf16>, vector<32x32xf32> -> vector<32x32xf32>
    %c0_21 = arith.constant 0 : index
    %c0_22 = arith.constant 0 : index
    %51 = vector.load %arg7[%c0_21, %c0_22] : memref<1x32xf32, #tpu.memory_space<vmem>>, vector<1x32xf32>
    %52 = vector.broadcast %51 : vector<1x32xf32> to vector<32x32xf32>
    %53 = arith.addf %50, %52 : vector<32x32xf32>
    %cst_23 = arith.constant 0.000000e+00 : f32
    %54 = vector.broadcast %cst_23 : f32 to vector<32x32xf32>
    %55 = arith.maximumf %53, %54 : vector<32x32xf32>
    %c0_24 = arith.constant 0 : index
    %c32 = arith.constant 32 : index
    %56 = vector.load %arg17[%c0_24, %c32] : memref<32x96xf32, #tpu.memory_space<vmem>>, vector<32x32xf32>
    tpu.vector_store %arg17[%c0_24, %c32], %55 {strides = array<i32>} : memref<32x96xf32, #tpu.memory_space<vmem>>, vector<32x32xf32>,
    %57 = vector.broadcast %24 : vector<32x1xf32> to vector<32x32xf32>
    %58 = arith.mulf %57, %55 : vector<32x32xf32>
    %59 = arith.truncf %58 : vector<32x32xf32> to vector<32x32xbf16>
    %c0_25 = arith.constant 0 : index
    %c0_26 = arith.constant 0 : index
    %60 = vector.load %arg8[%c0_25, %c0_26] : memref<32x32xf32, #tpu.memory_space<vmem>>, vector<32x32xf32>
    %61 = arith.truncf %60 : vector<32x32xf32> to vector<32x32xbf16>
    %cst_27 = arith.constant dense<0.000000e+00> : vector<32x32xf32>
    %62 = tpu.matmul %59, %61, %cst_27 {dimension_numbers = #tpu.dot_dimension_numbers<[1], [0], [0], [1], [0, 0, 1, 1], [], []>} : vector<32x32xbf16>, vector<32x32xbf16>, vector<32x32xf32> -> vector<32x32xf32>
    %63 = arith.truncf %62 : vector<32x32xf32> to vector<32x32xbf16>
    %cst_28 = arith.constant dense<0.000000e+00> : vector<32x32xf32>
    %64 = tpu.matmul %27, %63, %cst_28 {dimension_numbers = #tpu.dot_dimension_numbers<[1], [0], [0], [1], [0, 0, 1, 1], [], []>} : vector<32x32xbf16>, vector<32x32xbf16>, vector<32x32xf32> -> vector<32x32xf32>
    %c0_29 = arith.constant 0 : index
    %c0_30 = arith.constant 0 : index
    %65 = vector.load %arg9[%c0_29, %c0_30] : memref<1x32xf32, #tpu.memory_space<vmem>>, vector<1x32xf32>
    %66 = vector.broadcast %65 : vector<1x32xf32> to vector<32x32xf32>
    %67 = arith.addf %64, %66 : vector<32x32xf32>
    %cst_31 = arith.constant 0.000000e+00 : f32
    %68 = vector.broadcast %cst_31 : f32 to vector<32x32xf32>
    %69 = arith.maximumf %67, %68 : vector<32x32xf32>
    %c0_32 = arith.constant 0 : index
    %c64 = arith.constant 64 : index
    %70 = vector.load %arg17[%c0_32, %c64] : memref<32x96xf32, #tpu.memory_space<vmem>>, vector<32x32xf32>
    tpu.vector_store %arg17[%c0_32, %c64], %69 {strides = array<i32>} : memref<32x96xf32, #tpu.memory_space<vmem>>, vector<32x32xf32>,
    %c0_33 = arith.constant 0 : index
    %c0_34 = arith.constant 0 : index
    %71 = vector.load %arg17[%c0_33, %c0_34] : memref<32x96xf32, #tpu.memory_space<vmem>>, vector<32x96xf32>
    %c0_35 = arith.constant 0 : index
    %c0_36 = arith.constant 0 : index
    %72 = vector.load %arg10[%c0_35, %c0_36] : memref<96x1xf32, #tpu.memory_space<vmem>>, vector<96x1xf32>
    %cst_37 = arith.constant dense<0.000000e+00> : vector<1x32xf32>
    %73 = tpu.matmul %72, %71, %cst_37 {dimension_numbers = #tpu.dot_dimension_numbers<[0], [1], [1], [0], [0, 1, 1, 0], [], []>} : vector<96x1xf32>, vector<32x96xf32>, vector<1x32xf32> -> vector<1x32xf32>
    %c0_38 = arith.constant 0 : index
    %c0_39 = arith.constant 0 : index
    %74 = vector.load %arg11[%c0_38, %c0_39] : memref<1x1xf32, #tpu.memory_space<vmem>>, vector<1x1xf32>
    %75 = vector.broadcast %74 : vector<1x1xf32> to vector<1x32xf32>
    %76 = arith.addf %73, %75 : vector<1x32xf32>
    %77 = tpu.iota {dimensions = array<i32: 0>} : vector<2x32xi32>
    %c0_40 = arith.constant 0 : index
    %c0_41 = arith.constant 0 : index
    %78 = vector.load %arg2[%c0_40, %c0_41] : memref<1x32xi32, #tpu.memory_space<vmem>>, vector<1x32xi32>
    %79 = vector.broadcast %78 : vector<1x32xi32> to vector<2x32xi32>
    %80 = arith.cmpi eq, %77, %79 : vector<2x32xi32>
    %cst_42 = arith.constant -1.000000e+30 : f32
    %81 = vector.shape_cast %76 : vector<1x32xf32> to vector<1x32xf32>
    %82 = vector.broadcast %81 : vector<1x32xf32> to vector<2x32xf32>
    %83 = vector.broadcast %cst_42 : f32 to vector<2x32xf32>
    %84 = arith.select %80, %82, %83 : vector<2x32xi1>, vector<2x32xf32>
    %cst_43 = arith.constant dense<0xFF800000> : vector<2xf32>
    %85 = vector.multi_reduction <maximumf>, %84, %cst_43 [1] : vector<2x32xf32> to vector<2xf32>
    %86 = vector.shape_cast %85 : vector<2xf32> to vector<2x1xf32>
    %87 = vector.broadcast %86 : vector<2x1xf32> to vector<2x32xf32>
    %88 = arith.subf %84, %87 : vector<2x32xf32>
    %89 = math.exp %88 : vector<2x32xf32>
    %cst_44 = arith.constant 0.000000e+00 : f32
    %90 = vector.broadcast %cst_44 : f32 to vector<2x32xf32>
    %91 = arith.select %80, %89, %90 : vector<2x32xi1>, vector<2x32xf32>
    %cst_45 = arith.constant dense<0.000000e+00> : vector<2xf32>
    %92 = vector.multi_reduction <add>, %91, %cst_45 [1] : vector<2x32xf32> to vector<2xf32>
    %93 = vector.shape_cast %92 : vector<2xf32> to vector<2x1xf32>
    %cst_46 = arith.constant 1.000000e-30 : f32
    %94 = vector.broadcast %cst_46 : f32 to vector<2x1xf32>
    %95 = arith.maximumf %93, %94 : vector<2x1xf32>
    %96 = vector.broadcast %95 : vector<2x1xf32> to vector<2x32xf32>
    %97 = arith.divf %91, %96 : vector<2x32xf32>
    %cst_47 = arith.constant dense<0.000000e+00> : vector<2x96xf32>
    %98 = tpu.matmul %97, %71, %cst_47 {dimension_numbers = #tpu.dot_dimension_numbers<[1], [0], [0], [1], [0, 0, 1, 1], [], []>} : vector<2x32xf32>, vector<32x96xf32>, vector<2x96xf32> -> vector<2x96xf32>
    %c0_48 = arith.constant 0 : index
    %c0_49 = arith.constant 0 : index
    %99 = vector.load %arg12[%c0_48, %c0_49] : memref<96x32xf32, #tpu.memory_space<vmem>>, vector<96x32xf32>
    %cst_50 = arith.constant dense<0.000000e+00> : vector<2x32xf32>
    %100 = tpu.matmul %98, %99, %cst_50 {dimension_numbers = #tpu.dot_dimension_numbers<[1], [0], [0], [1], [0, 0, 1, 1], [], []>} : vector<2x96xf32>, vector<96x32xf32>, vector<2x32xf32> -> vector<2x32xf32>
    %c0_51 = arith.constant 0 : index
    %c0_52 = arith.constant 0 : index
    %101 = vector.load %arg13[%c0_51, %c0_52] : memref<1x32xf32, #tpu.memory_space<vmem>>, vector<1x32xf32>
    %102 = vector.broadcast %101 : vector<1x32xf32> to vector<2x32xf32>
    %103 = arith.addf %100, %102 : vector<2x32xf32>
    %cst_53 = arith.constant 0.000000e+00 : f32
    %104 = vector.broadcast %cst_53 : f32 to vector<2x32xf32>
    %105 = arith.maximumf %103, %104 : vector<2x32xf32>
    %c0_54 = arith.constant 0 : index
    %c0_55 = arith.constant 0 : index
    %106 = vector.load %arg14[%c0_54, %c0_55] : memref<32x2xf32, #tpu.memory_space<vmem>>, vector<32x2xf32>
    %cst_56 = arith.constant dense<0.000000e+00> : vector<2x2xf32>
    %107 = tpu.matmul %105, %106, %cst_56 {dimension_numbers = #tpu.dot_dimension_numbers<[1], [0], [0], [1], [0, 0, 1, 1], [], []>} : vector<2x32xf32>, vector<32x2xf32>, vector<2x2xf32> -> vector<2x2xf32>
    %c0_57 = arith.constant 0 : index
    %c0_58 = arith.constant 0 : index
    %108 = vector.load %arg15[%c0_57, %c0_58] : memref<1x2xf32, #tpu.memory_space<vmem>>, vector<1x2xf32>
    %109 = vector.broadcast %108 : vector<1x2xf32> to vector<2x2xf32>
    %110 = arith.addf %107, %109 : vector<2x2xf32>
    %c0_59 = arith.constant 0 : index
    %c0_60 = arith.constant 0 : index
    %111 = vector.load %arg16[%c0_59, %c0_60] : memref<2x2xf32, #tpu.memory_space<vmem>>, vector<2x2xf32>
    tpu.vector_store %arg16[%c0_59, %c0_60], %110 {strides = array<i32>} : memref<2x2xf32, #tpu.memory_space<vmem>>, vector<2x2xf32>,
    return
  }
}

</mosaic_0001>

<bundles_post_ra>
// kernel: gcn_forward.1
= control target key start
LH: loop header
LB: loop body
LE: loop exit
PB: predicated region body
PF: predicated region fallthrough
CT: control target
= control target key end

     0   :  { %s1824_s0 = inlined_call_operand.vmem [shape: s32[1,64], index: 0, kind: input, shape index: {}]   ;;  %s1825_s1 = inlined_call_operand.vmem [shape: s32[1,64], index: 1, kind: input, shape index: {}]   ;;  %s1826_s2 = inlined_call_operand.vmem [shape: s32[1,32], index: 2, kind: input, shape index: {}]   ;;  %s1827_s3 = inlined_call_operand.vmem [shape: f32[32,16], index: 3, kind: input, shape index: {}]   ;;  %s1828_s4 = inlined_call_operand.vmem [shape: f32[16,32], index: 4, kind: input, shape index: {}]   ;;  %s1829_s5 = inlined_call_operand.vmem [shape: f32[1,32], index: 5, kind: input, shape index: {}]   ;;  %s1830_s6 = inlined_call_operand.vmem [shape: f32[32,32], index: 6, kind: input, shape index: {}]   ;;  %s1831_s7 = inlined_call_operand.vmem [shape: f32[1,32], index: 7, kind: input, shape index: {}]   ;;  %s1832_s8 = inlined_call_operand.vmem [shape: f32[32,32], index: 8, kind: input, shape index: {}]   ;;  %s1833_s9 = inlined_call_operand.vmem [shape: f32[1,32], index: 9, kind: input, shape index: {}]   ;;  %s1834_s10 = inlined_call_operand.vmem [shape: f32[96,1], index: 10, kind: input, shape index: {}]   ;;  %s1835_s11 = inlined_call_operand.<no memory space> [shape: f32[1,1], index: 11, kind: input, shape index: {}]   ;;  %s1836_s12 = inlined_call_operand.vmem [shape: f32[96,32], index: 12, kind: input, shape index: {}]   ;;  %s1837_s13 = inlined_call_operand.vmem [shape: f32[1,32], index: 13, kind: input, shape index: {}]   ;;  %s1838_s14 = inlined_call_operand.vmem [shape: f32[32,2], index: 14, kind: input, shape index: {}]   ;;  %s1839_s15 = inlined_call_operand.vmem [shape: f32[1,2], index: 15, kind: input, shape index: {}]   ;;  %s1840_s16 = inlined_call_operand.hbm [shape: f32[2,2], index: 16, kind: output, shape index: {}]  }
   0x1   :  { %1841 = sst [smem:[#allocation7_spill]] %s1824_s0  ;;  %v21_v0 = vstv %s1835_s11 }
   0x2   :  { %22 = vst [vmem:[#allocation3] sm:$0x1] %v21_v0 }
   0x3   :  { %v57_v1 = vlaneseq  ;;  %s1842_s25 = sld [smem:[#allocation7_spill]]  ;;  %v1127_v4 = vld [vmem:[%s1825_s1] ss:$0 sm:$0xff] }
   0x5   :  { %v1547_v3 = vshrl.u32 %v57_v1, 7 }
   0x9   :  { %v1132_v2 = vld [vmem:[%s1842_s25] ss:$0 sm:$0xff] }
   0xa   :  { %23 = vsyncpa [#allocation5], 0  ;;  %vm110_vm0 = vcmask 523264   ;;  %v59_v5 = vadd.s32 8, %v1547_v3  ;;  %vm84_vm1 = vcmp.eq.s32.totalorder %v1547_v3, %v1132_v2  ;;  %v60_v6 = vadd.s32 16, %v1547_v3  ;;  %v251_v42 = vld [vmem:[%s1827_s3] sm:$0xff] }
   0xb   :  { %v61_v7 = vadd.s32 24, %v1547_v3  ;;  %v1449_v8 = vmov 0.0   ;;  %vm67_vm2 = vcmp.eq.s32.totalorder %v1547_v3, %v1127_v4  ;;  %v97_v10 = vand.u32 127, %v57_v1  ;;  %vm1355_vm6 = vmpackc.low %vm110_vm0, %vm110_vm0  ;;  %v252_v44 = vld [vmem:[%s1827_s3 + $0x8] sm:$0xff]  ;;  %v253_v52 = vld [vmem:[%s1827_s3 + $0x10] sm:$0xff]  ;;  %s1450_s22 = smov 32  }
   0xc   :  { %v1133_v9 = vsel %vm84_vm1, 1.0, %v1449_v8  ;;  %vm85_vm3 = vcmp.eq.s32.totalorder %v59_v5, %v1132_v2  ;;  %vm86_vm4 = vcmp.eq.s32.totalorder %v60_v6, %v1132_v2  ;;  %v1128_v11 = vsel %vm67_vm2, 1.0, %v1449_v8  ;;  %v254_v53 = vld [vmem:[%s1827_s3 + $0x18] sm:$0xff]  ;;  %v318_v60 = vld [vmem:[%s1828_s4] sm:$0xff]  ;;  %v319_v61 = vld [vmem:[%s1828_s4 + $0x8] sm:$0xff]  ;;  %s1451_s3 = smov 64  }
   0xd   :  { %vm87_vm5 = vcmp.eq.s32.totalorder %v61_v7, %v1132_v2  ;;  %v1134_v12 = vsel %vm85_vm3, 1.0, %v1449_v8  ;;  %v1135_v13 = vsel %vm86_vm4, 1.0, %v1449_v8  ;;  %1242 = vmatprep.mubr.msk.f32.mxu0 %vm110_vm0, %v1128_v11  ;;  %vm99_vm7 = vcmp.eq.s32.totalorder %v59_v5, %v97_v10  ;;  %v398_v11 = vld [vmem:[%s1830_s6] sm:$0xff]  ;;  %s1455_s28 = smov [#allocation4]  }
   0xe   :  { %v1136_v14 = vsel %vm87_vm5, 1.0, %v1449_v8  ;;  %v1354_v15 = vpack.c.bf16 %v1134_v12, %v1133_v9  ;;  %vm68_vm8 = vcmp.eq.s32.totalorder %v59_v5, %v1127_v4  ;;  %vm69_vm9 = vcmp.eq.s32.totalorder %v60_v6, %v1127_v4  ;;  %v399_v12 = vld [vmem:[%s1830_s6 + $0x8] sm:$0xff] }
   0xf   :  { %v1360_v16 = vpack.c.bf16 %v1136_v14, %v1135_v13  ;;  %v1129_v17 = vsel %vm68_vm8, 1.0, %v1449_v8  ;;  %v1130_v18 = vsel %vm69_vm9, 1.0, %v1449_v8  ;;  %vm70_vm10 = vcmp.eq.s32.totalorder %v61_v7, %v1127_v4  ;;  %v400_v14 = vld [vmem:[%s1830_s6 + $0x10] sm:$0xff] }
  0x10   :  { %1356 = vmatprep.subr.msk.bf16.mxu0 %vm1355_vm6, %v1354_v15  ;;  %v1131_v19 = vsel %vm70_vm10, 1.0, %v1449_v8  ;;  %vm98_vm11 = vcmp.eq.s32.totalorder %v1547_v3, %v97_v10  ;;  %v1138_v20 = vsel %vm99_vm7, 1.0, %v1449_v8  ;;  %vm101_vm12 = vcmp.eq.s32.totalorder %v61_v7, %v97_v10 }
  0x11   :  { %1359 = vmatpush3.bf16.xpose.msk.msra.mxu0 %vm1355_vm6, %v1354_v15  ;;  %v1137_v21 = vsel %vm98_vm11, 1.0, %v1449_v8  ;;  %vm100_vm13 = vcmp.eq.s32.totalorder %v60_v6, %v97_v10  ;;  %vm220_vm14 = vcmask 261120   ;;  %v1140_v26 = vsel %vm101_vm12, 1.0, %v1449_v8  ;;  %v401_v15 = vld [vmem:[%s1830_s6 + $0x18] sm:$0xff] }
  0x12   :  { %1362 = vmatprep.subr.msk.bf16.mxu0 %vm1355_vm6, %v1360_v16  ;;  %v1139_v27 = vsel %vm100_vm13, 1.0, %v1449_v8  ;;  %v320_v0 = vpack.c.bf16 %v319_v61, %v318_v60  ;;  %vm328_vm3 = vcmask 130048   ;;  %v402_v13 = vpack.c.bf16 %v399_v12, %v398_v11 }
  0x13   :  { %vm537_vm4 = vcmask 523520   ;;  %vm1453_vm5 = vmmov 0   ;;  %vm750_vm7 = vcmask 785408   ;;  %vm847_vm10 = vcmask 254976  }
  0x14   :  { %vm1368_vm8 = vmpackc.low %vm750_vm7, %vm750_vm7  ;;  %vm1111_vm11 = vcmask 9216  }
  0x19   :  { %1365 = vmatpush3.bf16.xpose.msk.msra.mxu0 %vm1355_vm6, %v1360_v16  ;;  %v403_v16 = vpack.c.bf16 %v401_v15, %v400_v14  ;;  %v1161_v15 = vld [vmem:[%s1833_s9] ss:$0 sm:$0xff]  ;;  %vm687_vm6 = vcmask 785920  }
  0x1a   :  { %1262 = vmatprep.subr.bf16.mxu0 %v402_v13 }
  0x20   :  { %1243 = vmatmul.mubr.msk.f32.vlgmr.msra.gmra.mrb[0].mxu0 %vm110_vm0, %v1129_v17  ;;  %v1151_v17 = vld [vmem:[%s1829_s5] ss:$0 sm:$0xff]  ;;  %s1119_s5 = sshll.u32 %s1455_s28, 4  ;;  %s1120_s5 = int_to_ptr.vmem [resolvable:$true] %s1119_s5 }
  0x21   :  { %1245 = vmatprep.mubr.msk.f32.mxu0 %vm110_vm0, %v1130_v18  ;;  %1263 = vmatpush3.bf16.msra.mxu0 %v402_v13  ;;  %p1430_p1 = scmp.lt.s32.totalorder %s1120_s5, %s1120_s5 }
  0x22   :  { %1264 = vmatprep.subr.bf16.mxu0 %v403_v16 }
  0x24   :  { %1246 = vmatmul.mubr.msk.f32.gmra.mrb[2].mxu0 %vm110_vm0, %v1131_v19 }
  0x25   :  { %1265 = vmatpush3.bf16.msra.mxu0 %v403_v16 }
  0xf3   :  { %v1244_v22 = vpop.f32.mrb[0].mxu0 }
  0xf4   :  { %v207_v23 = vadd.f32 %v1244_v22, %v1138_v20  ;;  %v201_v24 = vpop.f32.mrb[1].mxu0 }
  0xf5   :  { %v202_v25 = vadd.f32 %v1137_v21, %v201_v24 }
  0xf6   :  { %v224_v34 = vsel %vm220_vm14, %v207_v23, 0.0 }
  0xf7   :  { %v1247_v28 = vpop.f32.mrb[2].mxu0  ;;  %v221_v29 = vsel %vm220_vm14, %v202_v25, 0.0 }
  0xf8   :  { %v217_v30 = vadd.f32 %v1247_v28, %v1140_v26  ;;  %v211_v31 = vpop.f32.mrb[3].mxu0  ;;  %222 = vadd.xlane.f32.xlu0 %v221_v29 }
  0xf9   :  { %v212_v32 = vadd.f32 %v1139_v27, %v211_v31 }
  0xfa   :  { %v230_v35 = vsel %vm220_vm14, %v217_v30, 0.0 }
  0xfb   :  { %v227_v33 = vsel %vm220_vm14, %v212_v32, 0.0 }
  0xfc   :  { %228 = vadd.xlane.f32.xlu1 %v227_v33  ;;  %225 = vadd.xlane.f32.xlu0 %v224_v34 }
 0x100   :  { %231 = vadd.xlane.f32.xlu1 %v230_v35 }
 0x185   :  { %v223_v36 = vpop.xlane.xlu0 %222 }
 0x186   :  { %1413 = vrsqrt.f32 %v223_v36  ;;  %vm233_vm15 = vcmp.gt.f32.partialorder %v223_v36, 0.0 }
 0x189   :  { %v229_v37 = vpop.xlane.xlu1 %228  ;;  %v226_v38 = vpop.xlane.xlu0 %225 }
 0x18a   :  { %1415 = vrsqrt.f32 %v229_v37  ;;  %vm234_vm0 = vcmp.gt.f32.partialorder %v226_v38, 0.0  ;;  %vm235_vm1 = vcmp.gt.f32.partialorder %v229_v37, 0.0 }
 0x18b   :  { %1417 = vrsqrt.f32 %v226_v38 }
 0x18d   :  { %v232_v39 = vpop.xlane.xlu1 %231 }
 0x18e   :  { %1419 = vrsqrt.f32 %v232_v39  ;;  %vm236_vm2 = vcmp.gt.f32.partialorder %v232_v39, 0.0 }
 0x190   :  { %v1414_v40 = vpop.eup %1413 }
 0x191   :  { %v1580_v41 = vsel %vm233_vm15, %v1414_v40, 0.0 }
 0x192   :  { %v255_v47 = vmul.f32 %v251_v42, %v1580_v41  ;;  %v245_v50 = vmul.f32 %v1580_v41, %v202_v25 }
 0x194   :  { %v1416_v43 = vpop.eup %1415 }
 0x195   :  { %v1418_v45 = vpop.eup %1417  ;;  %v1591_v48 = vsel %vm235_vm1, %v1416_v43, 0.0  ;;  %v548_v43 = vld [vmem:[%s1832_s8] sm:$0xff] }
 0x196   :  { %v1588_v46 = vsel %vm234_vm0, %v1418_v45, 0.0  ;;  %v257_v58 = vmul.f32 %v253_v52, %v1591_v48  ;;  %v247_v1 = vmul.f32 %v1591_v48, %v212_v32 }
 0x197   :  { %v256_v49 = vmul.f32 %v252_v44, %v1588_v46  ;;  %v246_v51 = vmul.f32 %v1588_v46, %v207_v23  ;;  %v549_v44 = vld [vmem:[%s1832_s8 + $0x8] sm:$0xff] }
 0x198   :  { %v1420_v54 = vpop.eup %1419  ;;  %v552_v45 = vpack.c.bf16 %v549_v44, %v548_v43 }
 0x199   :  { %v1602_v55 = vsel %vm236_vm2, %v1420_v54, 0.0  ;;  %v259_v56 = vpack.c.bf16 %v256_v49, %v255_v47  ;;  %v1604_v57 = vpack.c.bf16 %v246_v51, %v245_v50  ;;  %v550_v47 = vld [vmem:[%s1832_s8 + $0x10] sm:$0xff]  ;;  %v551_v49 = vld [vmem:[%s1832_s8 + $0x18] sm:$0xff]  ;;  %v1156_v51 = vld [vmem:[%s1831_s7] ss:$0 sm:$0xff] }
 0x19a   :  { %v258_v59 = vmul.f32 %v254_v53, %v1602_v55  ;;  %v248_v63 = vmul.f32 %v1602_v55, %v217_v30  ;;  %1278 = vmatprep.subr.bf16.mxu0 %v552_v45  ;;  %v553_v50 = vpack.c.bf16 %v551_v49, %v550_v47 }
 0x19b   :  { %1248 = vmatprep.subr.bf16.mxu1 %v259_v56  ;;  %1252 = vmatprep.mubr.msk.bf16.mxu1 %vm220_vm14, %v1604_v57 }
 0x19c   :  { %1249 = vmatpush3.bf16.msra.mxu1 %v259_v56  ;;  %v260_v62 = vpack.c.bf16 %v258_v59, %v257_v58  ;;  %v1618_v2 = vpack.c.bf16 %v248_v63, %v247_v1 }
 0x19e   :  { %1250 = vmatprep.subr.bf16.mxu1 %v260_v62 }
 0x1a0   :  { %1251 = vmatpush3.bf16.msra.mxu1 %v260_v62 }
 0x1a1   :  { %1256 = vmatprep.subr.bf16.mxu1 %v320_v0 }
 0x1a3   :  { %1253 = vmatmul.mubr.msk.bf16.vlgmr.msra.gmra.mrb[0].mxu1 %vm220_vm14, %v1618_v2 }
 0x1a4   :  { %1257 = vmatpush3.bf16.msra.mxu1 %v320_v0 }
 0x276   :  { %v1254_v4 = vpop.f32.mrb[0].mxu1 }
 0x277   :  { %v301_v5 = vpop.f32.mrb[1].mxu1 }
 0x278   :  { %v1255_v6 = vpop.f32.mrb[2].mxu1 }
 0x279   :  { %v317_v7 = vpack.c.bf16 %v1255_v6, %v1254_v4  ;;  %v304_v9 = vpop.f32.mrb[3].mxu1 }
 0x27a   :  { %v316_v10 = vpack.c.bf16 %v304_v9, %v301_v5 }
 0x27c   :  { %1258 = vmatprep.mubr.msk.bf16.mxu1 %vm328_vm3, %v316_v10 }
 0x27d   :  { %1259 = vmatmul.mubr.msk.bf16.vlgmr.msra.gmra.mrb[4].mxu1 %vm328_vm3, %v317_v7 }
 0x27e   :  { %1274 = vmatprep.mubr.msk.bf16.mxu1 %vm220_vm14, %v1604_v57 }
 0x350   :  { %v1260_v18 = vpop.f32.mrb[4].mxu1 }
 0x351   :  { %v378_v19 = vadd.f32 %v1260_v18, %v1151_v17  ;;  %v369_v20 = vpop.f32.mrb[5].mxu1 }
 0x352   :  { %v370_v21 = vadd.f32 %v1151_v17, %v369_v20  ;;  %v1261_v22 = vpop.f32.mrb[6].mxu1 }
 0x353   :  { %v386_v23 = vmax.f32 %v378_v19, 0.0  ;;  %v381_v24 = vadd.f32 %v1261_v22, %v1151_v17  ;;  %v372_v25 = vpop.f32.mrb[7].mxu1 }
 0x354   :  { %v384_v26 = vmax.f32 %v370_v21, 0.0  ;;  %v373_v27 = vadd.f32 %v1151_v17, %v372_v25  ;;  %v1452_v25 = vmov 0.0|0.0  }
 0x355   :  { %390 = vst.msk [vmem:[#allocation2 + $0x10] sm:$0xff] %vm220_vm14, %v386_v23  ;;  %v387_v28 = vmax.f32 %v381_v24, 0.0  ;;  %v394_v30 = vmul.f32 %v386_v23, %v1591_v48 }
 0x356   :  { %388 = vst.msk [vmem:[#allocation2] sm:$0xff] %vm220_vm14, %v384_v26  ;;  %v385_v29 = vmax.f32 %v373_v27, 0.0  ;;  %v392_v32 = vmul.f32 %v384_v26, %v1580_v41 }
 0x357   :  { %391 = vst.msk [vmem:[#allocation2 + $0x18] sm:$0xff] %vm220_vm14, %v387_v28  ;;  %v395_v31 = vmul.f32 %v387_v28, %v1602_v55  ;;  %v696_v28 = vld [vmem:[%s1834_s10] sm:$0xff] }
 0x358   :  { %389 = vst.msk [vmem:[#allocation2 + $0x8] sm:$0xff] %vm220_vm14, %v385_v29  ;;  %v393_v33 = vmul.f32 %v385_v29, %v1588_v46  ;;  %v697_v29 = vld [vmem:[%s1834_s10 + $0x8] sm:$0xff] }
 0x359   :  { %v397_v34 = vpack.c.bf16 %v395_v31, %v394_v30  ;;  %v708_v30 = vld [vmem:[#allocation3] sm:$0x1]  ;;  %v1454_v31 = vmov 0  }
 0x35a   :  { %v396_v35 = vpack.c.bf16 %v393_v33, %v392_v32  ;;  %1411 = vset.pattern.permute.xlu1 %v1454_v31  ;;  %v698_v32 = vld [vmem:[%s1834_s10 + $0x10] sm:$0xff]  ;;  %v699_v33 = vld [vmem:[%s1834_s10 + $0x18] sm:$0xff] }
 0x35c   :  { %1266 = vmatprep.mubr.msk.bf16.mxu0 %vm220_vm14, %v396_v35  ;;  %v701_v35 = vld [vmem:[%s1834_s10 + $0x28] sm:$0xff] }
 0x35d   :  { %1267 = vmatmul.mubr.msk.bf16.vlgmr.msra.gmra.mrb[4].mxu0 %vm220_vm14, %v397_v34  ;;  %v700_v34 = vld [vmem:[%s1834_s10 + $0x20] sm:$0xff] }
 0x35e   :  { %1279 = vmatpush3.bf16.msra.mxu0 %v552_v45 }
 0x35f   :  { %1280 = vmatprep.subr.bf16.mxu0 %v553_v50 }
 0x362   :  { %1281 = vmatpush3.bf16.msra.mxu0 %v553_v50 }
 0x363   :  { %1366 = vmatprep.subr.bf16.mxu0 %v1452_v25 }
 0x430   :  { %v1268_v36 = vpop.f32.mrb[4].mxu0 }
 0x431   :  { %v444_v37 = vpop.f32.mrb[5].mxu0 }
 0x432   :  { %v1269_v38 = vpop.f32.mrb[6].mxu0 }
 0x433   :  { %v460_v39 = vpack.c.bf16 %v1269_v38, %v1268_v36  ;;  %v447_v40 = vpop.f32.mrb[7].mxu0  ;;  %v702_v36 = vld [vmem:[%s1834_s10 + $0x30] sm:$0xff]  ;;  %v704_v38 = vld [vmem:[%s1834_s10 + $0x40] sm:$0xff] }
 0x434   :  { %v459_v42 = vpack.c.bf16 %v447_v40, %v444_v37  ;;  %v703_v37 = vld [vmem:[%s1834_s10 + $0x38] sm:$0xff]  ;;  %v706_v40 = vld [vmem:[%s1834_s10 + $0x50] sm:$0xff] }
 0x436   :  { %1270 = vmatprep.subr.bf16.mxu1 %v459_v42 }
 0x437   :  { %1271 = vmatpush3.bf16.msra.mxu1 %v459_v42  ;;  %v707_v42 = vld [vmem:[%s1834_s10 + $0x58] sm:$0xff] }
 0x438   :  { %1272 = vmatprep.subr.bf16.mxu1 %v460_v39 }
 0x43b   :  { %1273 = vmatpush3.bf16.msra.mxu1 %v460_v39  ;;  %v705_v39 = vld [vmem:[%s1834_s10 + $0x48] sm:$0xff] }
 0x43e   :  { %1275 = vmatmul.mubr.msk.bf16.vlgmr.msra.gmra.mrb[8].mxu1 %vm220_vm14, %v1618_v2 }
 0x43f   :  { %1290 = vmatprep.mubr.msk.bf16.mxu1 %vm220_vm14, %v1604_v57 }
 0x511   :  { %v1276_v52 = vpop.f32.mrb[8].mxu1 }
 0x512   :  { %v511_v53 = vadd.f32 %v1276_v52, %v1156_v51  ;;  %v502_v54 = vpop.f32.mrb[9].mxu1 }
 0x513   :  { %v503_v56 = vadd.f32 %v1156_v51, %v502_v54  ;;  %v1277_v57 = vpop.f32.mrb[10].mxu1 }
 0x514   :  { %v519_v58 = vmax.f32 %v511_v53, 0.0  ;;  %v514_v59 = vadd.f32 %v1277_v57, %v1156_v51  ;;  %v505_v60 = vpop.f32.mrb[11].mxu1 }
 0x515   :  { %v517_v61 = vmax.f32 %v503_v56, 0.0  ;;  %v506_v62 = vadd.f32 %v1156_v51, %v505_v60 }
 0x516   :  { %v520_v63 = vmax.f32 %v514_v59, 0.0  ;;  %529 = vrot.lane.b32.xlu0 %v519_v58, %s1450_s22  ;;  %v544_v6 = vmul.f32 %v519_v58, %v1591_v48  ;;  %v716_v58 = vsub.s32 0, %v1547_v3 }
 0x517   :  { %v518_v0 = vmax.f32 %v506_v62, 0.0  ;;  %v542_v4 = vmul.f32 %v517_v61, %v1580_v41 }
 0x518   :  { %v545_v1 = vmul.f32 %v520_v63, %v1602_v55 }
 0x519   :  { %v543_v5 = vmul.f32 %v518_v0, %v1588_v46  ;;  %527 = vrot.lane.b32.xlu1 %v518_v0, %s1450_s22 }
 0x51a   :  { %525 = vrot.lane.b32.xlu0 %v517_v61, %s1450_s22  ;;  %v547_v9 = vpack.c.bf16 %v545_v1, %v544_v6  ;;  %v1169_v61 = vld [vmem:[%s1826_s2] ss:$0 sm:$0xff] }
 0x51b   :  { %v546_v7 = vpack.c.bf16 %v543_v5, %v542_v4  ;;  %vm841_vm9 = vcmp.eq.s32.totalorder %v1547_v3, %v1169_v61  ;;  %v934_v3 = vld [vmem:[%s1836_s12] sm:$0xff] }
 0x51d   :  { %1282 = vmatprep.mubr.msk.bf16.mxu0 %vm220_vm14, %v546_v7 }
 0x51e   :  { %1283 = vmatmul.mubr.msk.bf16.vlgmr.msra.gmra.mrb[8].mxu0 %vm220_vm14, %v547_v9 }
 0x51f   :  { %1302 = vmatprep.mubr.msk.f32.mxu0 %vm1453_vm5, %v1449_v8 }
 0x588   :  { %v530_v10 = vpop.permute.xlu0 %529 }
 0x589   :  { %540 = vst.msk [vmem:[#allocation2 + $0x10] sm:$0xff] %vm537_vm4, %v530_v10 }
 0x58b   :  { %v528_v55 = vpop.permute.xlu1 %527 }
 0x58c   :  { %539 = vst.msk [vmem:[#allocation2 + $0x8] sm:$0xff] %vm537_vm4, %v528_v55  ;;  %v526_v41 = vpop.permute.xlu0 %525 }
 0x58d   :  { %538 = vst.msk [vmem:[#allocation2] sm:$0xff] %vm537_vm4, %v526_v41 }
 0x5f1   :  { %v1284_v46 = vpop.f32.mrb[8].mxu0 }
 0x5f2   :  { %v594_v48 = vpop.f32.mrb[9].mxu0 }
 0x5f3   :  { %v1285_v11 = vpop.f32.mrb[10].mxu0 }
 0x5f4   :  { %v610_v12 = vpack.c.bf16 %v1285_v11, %v1284_v46  ;;  %v597_v13 = vpop.f32.mrb[11].mxu0  ;;  %v935_v11 = vld [vmem:[%s1836_s12 + $0x8] sm:$0xff] }
 0x5f5   :  { %v609_v14 = vpack.c.bf16 %v597_v13, %v594_v48  ;;  %v1381_v13 = vpack.c.bf16 %v935_v11, %v934_v3 }
 0x5f7   :  { %1286 = vmatprep.subr.bf16.mxu1 %v609_v14 }
 0x5f8   :  { %1287 = vmatpush3.bf16.msra.mxu1 %v609_v14 }
 0x5f9   :  { %1288 = vmatprep.subr.bf16.mxu1 %v610_v12 }
 0x5fc   :  { %1289 = vmatpush3.bf16.msra.mxu1 %v610_v12 }
 0x5fd   :  { %1374 = vmatprep.subr.bf16.mxu1 %v1452_v25 }
 0x5ff   :  { %1291 = vmatmul.mubr.msk.bf16.vlgmr.msra.gmra.mrb[12].mxu1 %vm220_vm14, %v1618_v2 }
 0x600   :  { %1313 = vmatprep.mubr.msk.f32.mxu1 %vm1453_vm5, %v1449_v8 }
 0x6d2   :  { %v1292_v16 = vpop.f32.mrb[12].mxu1 }
 0x6d3   :  { %v661_v17 = vadd.f32 %v1292_v16, %v1161_v15  ;;  %v652_v18 = vpop.f32.mrb[13].mxu1  ;;  %v937_v16 = vld [vmem:[%s1836_s12 + $0x18] sm:$0xff] }
 0x6d4   :  { %v653_v19 = vadd.f32 %v1161_v15, %v652_v18  ;;  %v1293_v20 = vpop.f32.mrb[14].mxu1  ;;  %v938_v18 = vld [vmem:[%s1836_s12 + $0x20] sm:$0xff] }
 0x6d5   :  { %v669_v21 = vmax.f32 %v661_v17, 0.0  ;;  %v655_v22 = vpop.f32.mrb[15].mxu1  ;;  %v664_v26 = vadd.f32 %v1293_v20, %v1161_v15 }
 0x6d6   :  { %v667_v23 = vmax.f32 %v653_v19, 0.0  ;;  %v656_v24 = vadd.f32 %v1161_v15, %v655_v22  ;;  %v936_v15 = vld [vmem:[%s1836_s12 + $0x10] sm:$0xff]  ;;  %v939_v19 = vld [vmem:[%s1836_s12 + $0x28] sm:$0xff] }
 0x6d7   :  { %679 = vrot.lane.b32.xlu0 %v669_v21, %s1451_s3  ;;  %v670_v27 = vmax.f32 %v664_v26, 0.0  ;;  %v1384_v17 = vpack.c.bf16 %v937_v16, %v936_v15  ;;  %v1387_v20 = vpack.c.bf16 %v939_v19, %v938_v18  ;;  %v940_v21 = vld [vmem:[%s1836_s12 + $0x30] sm:$0xff] }
 0x6d8   :  { %675 = vrot.lane.b32.xlu1 %v667_v23, %s1451_s3  ;;  %v668_v2 = vmax.f32 %v656_v24, 0.0  ;;  %v942_v23 = vld [vmem:[%s1836_s12 + $0x40] sm:$0xff]  ;;  %v943_v24 = vld [vmem:[%s1836_s12 + $0x48] sm:$0xff]  ;;  %v944_v26 = vld [vmem:[%s1836_s12 + $0x50] sm:$0xff] }
 0x6dc   :  { %677 = vrot.lane.b32.xlu1 %v668_v2, %s1451_s3  ;;  %v1393_v2 = vpack.c.bf16 %v943_v24, %v942_v23 }
 0x6e0   :  { %531 = vrot.lane.b32.xlu1 %v520_v63, %s1450_s22 }
 0x6e4   :  { %681 = vrot.lane.b32.xlu1 %v670_v27, %s1451_s3  ;;  %v945_v27 = vld [vmem:[%s1836_s12 + $0x58] sm:$0xff] }
 0x6e8   :  { %711 = vperm.xlu1 %1411, %v708_v30   ;;  %v1028_v30 = vld [vmem:[%s1838_s14 + $0x8] sm:$0xff] }
 0x6f5   :  { %718 = vxpose.xlu0.b32.start [1/12] (short) (narrow) %v696_v28, 8  ;;  %v1396_v28 = vpack.c.bf16 %v945_v27, %v944_v26 }
 0x6f9   :  { %719 = vxpose.xlu0.b32.cont [2/12] (short) (narrow) %v697_v29, 8  ;;  %v1027_v29 = vld [vmem:[%s1838_s14] sm:$0xff] }
 0x6fd   :  { %720 = vxpose.xlu0.b32.cont [3/12] (short) (narrow) %v698_v32, 8 }
 0x701   :  { %721 = vxpose.xlu0.b32.cont [4/12] (short) (narrow) %v699_v33, 8 }
 0x705   :  { %722 = vxpose.xlu0.b32.cont [5/12] (short) (narrow) %v700_v34, 8  ;;  %v1029_v34 = vld [vmem:[%s1838_s14 + $0x10] sm:$0xff] }
 0x709   :  { %723 = vxpose.xlu0.b32.cont [6/12] (short) (narrow) %v701_v35, 8  ;;  %v1030_v35 = vld [vmem:[%s1838_s14 + $0x18] sm:$0xff]  ;;  %s1425_s14 = scalar_lea.vmem %s1120_s5, 32 }
 0x70a   :  { %p1426_p0 = scmp.ne.s32.totalorder %s1120_s5, %s1425_s14  ;;  %p1431_p2 = scmp.lt.s32.totalorder %s1425_s14, %s1425_s14 }
 0x70c   :  { %p1432_p3 = por %p1431_p2, %p1430_p1 }
 0x70d   :  { %724 = vxpose.xlu0.b32.cont [7/12] (short) (narrow) %v702_v36, 8  ;;  %v1402_v36 = vpack.c.bf16 %v1030_v35, %v1029_v34 }
 0x70e   :  { %p1433_p4 = pnand %p1432_p3, %p1426_p0 }
 0x711   :  { %725 = vxpose.xlu0.b32.cont [8/12] (short) (narrow) %v703_v37, 8  ;;  %v1171_v37 = vld [vmem:[%s1837_s13] ss:$0 sm:$0xff] }
 0x715   :  { %726 = vxpose.xlu0.b32.cont [9/12] (short) (narrow) %v704_v38, 8 }
 0x719   :  { %727 = vxpose.xlu0.b32.cont [10/12] (short) (narrow) %v705_v39, 8 }
 0x71d   :  { %728 = vxpose.xlu0.b32.cont [11/12] (short) (narrow) %v706_v40, 8 }
 0x721   :  { %729 = vxpose.xlu0.b32.end [12/12] (short) (narrow) %v707_v42, 8  ;;  %v1173_v42 = vld [vmem:[%s1839_s15] ss:$0 sm:$0xff] }
 0x749   :  { %v680_v43 = vpop.permute.xlu0 %679 }
 0x74a   :  { %690 = vst.msk [vmem:[#allocation2 + $0x10] sm:$0xff] %vm687_vm6, %v680_v43  ;;  %v676_v44 = vpop.permute.xlu1 %675  ;;  %1412 = vset.pattern.permute.xlu0 %v1454_v31  ;;  %v1399_v31 = vpack.c.bf16 %v1028_v30, %v1027_v29 }
 0x74b   :  { %688 = vst.msk [vmem:[#allocation2] sm:$0xff] %vm687_vm6, %v676_v44 }
 0x74e   :  { %v678_v45 = vpop.permute.xlu1 %677 }
 0x74f   :  { %689 = vst.msk [vmem:[#allocation2 + $0x8] sm:$0xff] %vm687_vm6, %v678_v45 }
 0x751   :  { %v694_v53 = vld [vmem:[#allocation2 + $0x10] sm:$0xff] }
 0x752   :  { %v532_v47 = vpop.permute.xlu1 %531  ;;  %v692_v50 = vld [vmem:[#allocation2] sm:$0xff] }
 0x753   :  { %541 = vst.msk [vmem:[#allocation2 + $0x18] sm:$0xff] %vm537_vm4, %v532_v47 }
 0x756   :  { %v682_v49 = vpop.permute.xlu1 %681  ;;  %v693_v51 = vld [vmem:[#allocation2 + $0x8] sm:$0xff] }
 0x757   :  { %691 = vst.msk [vmem:[#allocation2 + $0x18] sm:$0xff] %vm687_vm6, %v682_v49  ;;  %v1367_v52 = vpack.c.bf16 %v693_v51, %v692_v50 }
 0x759   :  { %1369 = vmatpush3.bf16.xpose.msk.msra.mxu0 %vm1368_vm8, %v1367_v52  ;;  %1376 = vmatpush3.bf16.msra.mxu1 %v1367_v52 }
 0x75a   :  { %1370 = vmatprep.subr.bf16.mxu0 %v1452_v25  ;;  %1377 = vmatprep.subr.bf16.mxu1 %v1452_v25 }
 0x75e   :  { %v695_v54 = vld [vmem:[#allocation2 + $0x18] sm:$0xff] }
 0x75f   :  { %v1371_v56 = vpack.c.bf16 %v695_v54, %v694_v53 }
 0x761   :  { %1373 = vmatpush3.bf16.xpose.msk.msra.mxu0 %vm1368_vm8, %v1371_v56  ;;  %1379 = vmatpush3.bf16.msra.mxu1 %v1371_v56 }
 0x762   :  { %1380 = vmatprep.subr.bf16.mxu1 %v1452_v25  ;;  %1398 = vmatprep.subr.bf16.mxu0 %v1452_v25 }
 0x767   :  { %v712_v59 = vpop.permute.xlu1 %711 }
 0x768   :  { %v717_v60 = vrot.slane %v712_v59, %v716_v58 }
 0x775   :  { %v734_v57 = vpop.trf.xlu0 }
 0x776   :  { %1303 = vmatmul.mubr.msk.f32.vlgmr.msra.gmra.mrb[12].mxu0 %vm750_vm7, %v734_v57 }
 0x777   :  { %1351 = vmatprep.mubr.msk.f32.mxu0 %vm1453_vm5, %v1449_v8  ;;  %1400 = vmatpush3.bf16.msra.mxu0 %v1399_v31 }
 0x778   :  { %1401 = vmatprep.subr.bf16.mxu0 %v1452_v25 }
 0x77b   :  { %1403 = vmatpush3.bf16.msra.mxu0 %v1402_v36 }
 0x849   :  { %v832_v62 = vpop.f32.mrb[12].mxu0 }
 0x84a   :  { %v833_v63 = vadd.f32 %v832_v62, %v717_v60  ;;  %v1304_v0 = vpop.f32.mrb[13].mxu0 }
 0x84c   :  { %v845_v1 = vrot.slane %v833_v63, %v716_v58 }
 0x84e   :  { %v846_v4 = vsel %vm841_vm9, %v845_v1, -1e+30 }
 0x84f   :  { %v848_v5 = vsel %vm847_vm10, %v846_v4, -inf }
 0x850   :  { %849 = vmax.xlane.f32.xlu1 %v848_v5 }
 0x8dd   :  { %v850_v6 = vpop.xlane.xlu1 %849 }
 0x8de   :  { %v851_v7 = vsub.f32 %v846_v4, %v850_v6 }
 0x8e0   :  { %v852_v9 = vmul.f32 1.442695, %v851_v7 }
 0x8e2   :  { %1421 = vpow2.f32 %v852_v9 }
 0x8ec   :  { %v1422_v10 = vpop.eup %1421 }
 0x8ed   :  { %v854_v55 = vsel %vm841_vm9, %v1422_v10, 0.0 }
 0x8ee   :  { %v855_v41 = vsel %vm847_vm10, %v854_v55, 0.0 }
 0x8ef   :  { %856 = vadd.xlane.f32.xlu1 %v855_v41 }
 0x97c   :  { %v857_v46 = vpop.xlane.xlu1 %856 }
 0x97d   :  { %v858_v48 = vmax.f32 %v857_v46, 1e-30 }
 0x97f   :  { %1423 = vrcp.f32 %v858_v48 }
 0x989   :  { %v1424_v12 = vpop.eup %1423 }
 0x98a   :  { %v860_v14 = vmul.f32 %v1424_v12, %v854_v55 }
 0x98c   :  { %1314 = vmatmul.mubr.msk.f32.vlgmr.msra.gmra.mrb[16].mxu1 %vm220_vm14, %v860_v14 }
 0x98d   :  { %1382 = vmatpush3.bf16.msra.mxu1 %v1381_v13  ;;  %1340 = vmatprep.mubr.msk.f32.mxu1 %vm1453_vm5, %v1449_v8  ;;  %v941_v8 = vld [vmem:[%s1836_s12 + $0x38] sm:$0xff] }
 0x98e   :  { %1383 = vmatprep.subr.bf16.mxu1 %v1452_v25  ;;  %v1390_v22 = vpack.c.bf16 %v941_v8, %v940_v21 }
 0x991   :  { %1385 = vmatpush3.bf16.msra.mxu1 %v1384_v17 }
 0x992   :  { %1386 = vmatprep.subr.bf16.mxu1 %v1452_v25 }
 0x995   :  { %1388 = vmatpush3.bf16.msra.mxu1 %v1387_v20 }
 0x996   :  { %1389 = vmatprep.subr.bf16.mxu1 %v1452_v25 }
 0x999   :  { %1391 = vmatpush3.bf16.msra.mxu1 %v1390_v22 }
 0x99a   :  { %1392 = vmatprep.subr.bf16.mxu1 %v1452_v25 }
 0x99d   :  { %1394 = vmatpush3.bf16.msra.mxu1 %v1393_v2 }
 0x99e   :  { %1395 = vmatprep.subr.bf16.mxu1 %v1452_v25 }
 0x9a1   :  { %1397 = vmatpush3.bf16.msra.mxu1 %v1396_v28 }
 0xa5f   :  { %v930_v32 = vpop.f32.mrb[16].mxu1 }
 0xa60   :  { %v1315_v33 = vpop.f32.mrb[17].mxu1  ;;  %1341 = vmatmul.mubr.msk.f32.vlgmr.msra.gmra.mrb[18].mxu1 %vm750_vm7, %v930_v32 }
 0xb33   :  { %v1022_v38 = vpop.f32.mrb[18].mxu1 }
 0xb34   :  { %v1023_v25 = vadd.f32 %v1171_v37, %v1022_v38  ;;  %v1342_v39 = vpop.f32.mrb[19].mxu1 }
 0xb36   :  { %v1026_v40 = vmax.f32 %v1023_v25, 0.0 }
 0xb38   :  { %1352 = vmatmul.mubr.msk.f32.vlgmr.msra.gmra.mrb[14].mxu0 %vm220_vm14, %v1026_v40 }
 0xc0b   :  { %v1107_v43 = vpop.f32.mrb[14].mxu0 }
 0xc0c   :  { %v1108_v44 = vadd.f32 %v1173_v42, %v1107_v43  ;;  %v1353_v45 = vpop.f32.mrb[15].mxu0 }
 0xc0e   :  { %1112 = vst.msk [vmem:[#allocation4] sm:$0x3] %vm1111_vm11, %v1108_v44 }
 0xc0f   :  { %1436 = shalt.err (!%p1433_p4)
}
 0xc10   :  { %s1437_s29 = scalar_lea.hbm %s1840_s16, 32 }
 0xc11   :  { %p1438_p5 = scmp.ne.s32.totalorder %s1840_s16, %s1437_s29  ;;  %p1441_p6 = scmp.lt.u32.totalorder %s1437_s29, %s1840_s16 }
 0xc13   :  { %p1443_p7 = pnand %p1441_p6, %p1438_p5 }
 0xc15   :  { %1446 = shalt.err (!%p1443_p7)
}
 0xc16   :  { %1122 = dma.vmem_to_hbm [thread:$0]  %s1120_s5, 32, %s1840_s16, [#allocation5]  }
 0xc17   :  { %1447 = dma.done.wait [#allocation5], 32  }
 0xc18   :  { %1448 = vsyncadd [#allocation5], 4294967264 }
 0xc19   :  { %1126 = vsyncpa [#allocation5], 1 }

</bundles_post_ra>
